<compile_context>
chip_gen: v7x
topology: tpu7x:2x2x1
jax: 0.10.0
libtpu: 0.0.40
codegen_flags: <defaults>
</compile_context>

<pallas_src>
import functools

import jax
import jax.numpy as jnp
from jax.experimental import pallas as pl
from jax.experimental.pallas import tpu as pltpu


def _lin_sq_ensemble_kernel(x_ref, wcat_ref, off_ref, out_ref):
    """Fused ensemble forward for one N-tile.

    x_ref    : VMEM (TILE_N, C)        input probabilities
    wcat_ref : VMEM (C, (M+1)*C)       [W_comb | lik0*W0 | ... | lik(M-1)*W(M-1)]
    off_ref  : SMEM (1,)               0.8 * offset
    out_ref  : VMEM (TILE_N, C)        ensemble prediction
    """
    c = x_ref.shape[1]
    n_models = wcat_ref.shape[1] // c - 1

    x = x_ref[...].astype(jnp.float32)
    wcat = wcat_ref[...].astype(jnp.float32)

    # Single lane-dense MXU matmul producing the weighted-sum term and every
    # per-model (likelihood-scaled) prediction in one (TILE_N, (M+1)*C) slab.
    fused = jnp.dot(x, wcat, preferred_element_type=jnp.float32)

    acc = fused[:, :c]                       # member_predictions @ weights
    min_num = fused[:, c:2 * c]              # lik[0] * pred_0  (seed the min)
    for m in range(1, n_models):             # small static M -> unrolled VPU mins
        lo = (m + 1) * c
        min_num = jnp.minimum(min_num, fused[:, lo:lo + c])

    # off_ref already carries the 0.8 epsilon scale.
    y = off_ref[0] * min_num + acc

    # TODO(synk): rebalance_probabilities source not provided; using
    # clamp-to-nonnegative + renormalize along the class (last) axis.
    y = jnp.maximum(y, 0.0)
    denom = jnp.maximum(jnp.sum(y, axis=-1, keepdims=True), 1e-30)  # no div-by-0
    out_ref[...] = (y * pl.reciprocal(denom, approx=False)).astype(out_ref.dtype)


@functools.partial(jax.jit, static_argnames=("tile_n",))
def lin_sq_ensemble_forward(x, w_stack, likelihoods, weights, offset, *, tile_n=128):
    n, c = x.shape
    m = w_stack.shape[0]

    # --- wrapper-side preprocessing (tiny, compiled once) ---------------------
    # Pack the M models plus the weighted-sum map into one lane-dense matrix.
    w_comb = jnp.einsum("m,mij->ij",
                        weights.astype(jnp.float32),
                        w_stack.astype(jnp.float32))                    # (C, C)
    w_lik = w_stack.astype(jnp.float32) * likelihoods.astype(jnp.float32)[:, None, None]
    wcat = jnp.concatenate([w_comb] + [w_lik[j] for j in range(m)], axis=1)  # (C,(M+1)C)

    # Fold the 0.8 epsilon scale into the offset scalar.
    off_scaled = jnp.reshape(0.8 * offset, (1,)).astype(jnp.float32)

    # Pad N up to a multiple of the tile so every grid block is full.
    n_pad = pl.cdiv(n, tile_n) * tile_n
    x_p = x.astype(jnp.float32)
    if n_pad != n:
        x_p = jnp.pad(x_p, ((0, n_pad - n), (0, 0)))

    grid = (n_pad // tile_n,)
    cost = pl.CostEstimate(
        flops=2 * n_pad * c * (m + 1) * c,
        transcendentals=0,
        bytes_accessed=(n_pad * c * 4) * 2 + c * (m + 1) * c * 4 + 4,
    )

    out = pl.pallas_call(
        _lin_sq_ensemble_kernel,
        out_shape=jax.ShapeDtypeStruct((n_pad, c), jnp.float32),
        grid=grid,
        in_specs=[
            pl.BlockSpec((tile_n, c), lambda i: (i, 0)),                 # x tile
            pl.BlockSpec((c, (m + 1) * c), lambda i: (0, 0)),            # Wcat (resident)
            pl.BlockSpec(memory_space=pltpu.MemorySpace.SMEM),           # 0.8*offset
        ],
        out_specs=pl.BlockSpec((tile_n, c), lambda i: (i, 0)),
        compiler_params=pltpu.CompilerParams(
            dimension_semantics=("parallel",),     # shard N across TCs on v7x
            vmem_limit_bytes=32 << 20,             # explicit; fits v5e/v6e/v7x
        ),
        cost_estimate=cost,
    )(x_p, wcat, off_scaled)
    return out[:n]


def _reference_forward(x, w_stack, likelihoods, weights, offset):
    """Pure-JAX reference mirroring the PyTorch forward."""
    member_predictions = jnp.stack(
        [x @ w_stack[j] for j in range(w_stack.shape[0])], axis=-1)      # (N, C, M)
    numerator_integrand = member_predictions * likelihoods               # (N, C, M)
    epsilon = 0.8 * jnp.min(numerator_integrand, axis=-1)                # (N, C)
    y = epsilon * offset + member_predictions @ weights                  # (N, C)
    y = jnp.maximum(y, 0.0)
    denom = jnp.maximum(jnp.sum(y, axis=-1, keepdims=True), 1e-30)
    return y / denom


if __name__ == "__main__":
    key = jax.random.PRNGKey(0)
    k_x, k_w, k_qw, k_lik = jax.random.split(key, 4)

    # Small shapes consistent with the module: N samples, C classes, M members.
    # N is not a multiple of the tile on purpose (exercises the padding path).
    N, C, M = 200, 8, 4

    # Input: rows are class-probability vectors.
    x = jax.nn.softmax(jax.random.normal(k_x, (N, C), jnp.float32), axis=-1)

    # Deterministic constituent models: row-stochastic linear maps.
    w_stack = jax.nn.softmax(
        jax.random.normal(k_w, (M, C, C), jnp.float32), axis=-1)

    # Integrand-model parameters (synthetic, deterministic).
    quad_weights = jax.random.uniform(k_qw, (M,), jnp.float32, 0.5, 1.5)
    likelihoods = jax.random.uniform(k_lik, (M,), jnp.float32, 0.1, 1.0)
    evidence = jnp.dot(quad_weights, likelihoods)
    weights = quad_weights * likelihoods / evidence                       # (M,)
    offset = jnp.reshape((1.0 - quad_weights.sum()) / evidence, (1,))     # (1,)

    out = lin_sq_ensemble_forward(x, w_stack, likelihoods, weights, offset,
                                  tile_n=128)
    out = jax.block_until_ready(out)

    ref = _reference_forward(x, w_stack, likelihoods, weights, offset)
    assert out.shape == (N, C)
    assert jnp.allclose(out, ref, atol=1e-5, rtol=1e-5), "mismatch vs reference"

    print("KERNEL_OK")
</pallas_src>

<mosaic_0001>
module attributes {stable_mosaic.version = 11 : i64} {
  func.func @_lin_sq_ensemble_kernel(%arg0: i32, %arg1: memref<128x8xf32, #tpu.memory_space<vmem>>, %arg2: memref<8x40xf32, #tpu.memory_space<vmem>>, %arg3: memref<1xf32, #tpu.memory_space<smem>>, %arg4: memref<128x8xf32, #tpu.memory_space<vmem>>) attributes {dimension_semantics = [#tpu.dimension_semantics<parallel>], iteration_bounds = array<i64: 2>, scalar_prefetch = 0 : i64, scratch_operands = 0 : i64, tpu.core_type = #tpu.core_type<tc>, window_params = [{transform_indices = @transform_0, window_bounds = array<i64: 128, 8>}, {pipeline_mode = #tpu.pipeline_mode<synchronous>, transform_indices = @transform_1, window_bounds = array<i64: 8, 40>}, {transform_indices = @transform_2, window_bounds = array<i64: 1>}, {transform_indices = @transform_3, window_bounds = array<i64: 128, 8>}]} {
    %c0 = arith.constant 0 : index
    %c0_0 = arith.constant 0 : index
    %0 = vector.load %arg1[%c0, %c0_0] : memref<128x8xf32, #tpu.memory_space<vmem>>, vector<128x8xf32>
    %c0_1 = arith.constant 0 : index
    %c0_2 = arith.constant 0 : index
    %1 = vector.load %arg2[%c0_1, %c0_2] : memref<8x40xf32, #tpu.memory_space<vmem>>, vector<8x40xf32>
    %cst = arith.constant dense<0.000000e+00> : vector<128x40xf32>
    %2 = tpu.matmul %0, %1, %cst {dimension_numbers = #tpu.dot_dimension_numbers<[1], [0], [0], [1], [0, 0, 1, 1], [], []>} : vector<128x8xf32>, vector<8x40xf32>, vector<128x40xf32> -> vector<128x40xf32>
    %3 = vector.extract_strided_slice %2 {offsets = [0, 0], sizes = [128, 8], strides = [1, 1]} : vector<128x40xf32> to vector<128x8xf32>
    %4 = vector.extract_strided_slice %2 {offsets = [0, 8], sizes = [128, 8], strides = [1, 1]} : vector<128x40xf32> to vector<128x8xf32>
    %5 = vector.extract_strided_slice %2 {offsets = [0, 16], sizes = [128, 8], strides = [1, 1]} : vector<128x40xf32> to vector<128x8xf32>
    %6 = arith.minimumf %4, %5 : vector<128x8xf32>
    %7 = vector.extract_strided_slice %2 {offsets = [0, 24], sizes = [128, 8], strides = [1, 1]} : vector<128x40xf32> to vector<128x8xf32>
    %8 = arith.minimumf %6, %7 : vector<128x8xf32>
    %9 = vector.extract_strided_slice %2 {offsets = [0, 32], sizes = [128, 8], strides = [1, 1]} : vector<128x40xf32> to vector<128x8xf32>
    %10 = arith.minimumf %8, %9 : vector<128x8xf32>
    %c0_3 = arith.constant 0 : index
    %11 = memref.load %arg3[%c0_3] : memref<1xf32, #tpu.memory_space<smem>>
    %12 = vector.broadcast %11 : f32 to vector<128x8xf32>
    %13 = arith.mulf %12, %10 : vector<128x8xf32>
    %14 = arith.addf %13, %3 : vector<128x8xf32>
    %cst_4 = arith.constant 0.000000e+00 : f32
    %15 = vector.broadcast %cst_4 : f32 to vector<128x8xf32>
    %16 = arith.maximumf %14, %15 : vector<128x8xf32>
    %cst_5 = arith.constant dense<0.000000e+00> : vector<128xf32>
    %17 = vector.multi_reduction <add>, %16, %cst_5 [1] : vector<128x8xf32> to vector<128xf32>
    %18 = vector.shape_cast %17 : vector<128xf32> to vector<128x1xf32>
    %cst_6 = arith.constant 1.000000e-30 : f32
    %19 = vector.broadcast %cst_6 : f32 to vector<128x1xf32>
    %20 = arith.maximumf %18, %19 : vector<128x1xf32>
    %21 = tpu.reciprocal %20 : vector<128x1xf32> -> vector<128x1xf32>
    %22 = vector.broadcast %21 : vector<128x1xf32> to vector<128x8xf32>
    %23 = arith.mulf %16, %22 : vector<128x8xf32>
    %c0_7 = arith.constant 0 : index
    %c0_8 = arith.constant 0 : index
    %24 = vector.load %arg4[%c0_7, %c0_8] : memref<128x8xf32, #tpu.memory_space<vmem>>, vector<128x8xf32>
    tpu.vector_store %arg4[%c0_7, %c0_8], %23 {strides = array<i32>} : memref<128x8xf32, #tpu.memory_space<vmem>>, vector<128x8xf32>,
    return
  }
  func.func @transform_0(%arg0: i32) -> (i32, i32) {
    %c0_i32 = arith.constant 0 : i32
    %c0_i32_0 = arith.constant 0 : i32
    return %arg0, %c0_i32 : i32, i32
  }
  func.func @transform_1(%arg0: i32) -> (i32, i32) {
    %c0_i32 = arith.constant 0 : i32
    %c0_i32_0 = arith.constant 0 : i32
    %c0_i32_1 = arith.constant 0 : i32
    return %c0_i32, %c0_i32_0 : i32, i32
  }
  func.func @transform_2(%arg0: i32) -> i32 {
    %c0_i32 = arith.constant 0 : i32
    %c0_i32_0 = arith.constant 0 : i32
    return %c0_i32 : i32
  }
  func.func @transform_3(%arg0: i32) -> (i32, i32) {
    %c0_i32 = arith.constant 0 : i32
    %c0_i32_0 = arith.constant 0 : i32
    return %arg0, %c0_i32 : i32, i32
  }
}

</mosaic_0001>

<bundles_post_ra>
// kernel: lin_sq_ensemble_forward.1
= control target key start
LH: loop header
LB: loop body
LE: loop exit
PB: predicated region body
PF: predicated region fallthrough
CT: control target
= control target key end

     0   :  { %s1139_s14 = smov 0   ;;  %s1570_s0 = inlined_call_operand.vmem [shape: f32[256,8], index: 0, kind: input, shape index: {}]   ;;  %s1571_s1 = inlined_call_operand.vmem [shape: f32[8,40], index: 1, kind: input, shape index: {}]   ;;  %s1572_s2 = inlined_call_operand.<no memory space> [shape: f32[1], index: 2, kind: input, shape index: {}]   ;;  %s1573_s3 = inlined_call_operand.vmem [shape: f32[256,8], index: 3, kind: output, shape index: {}]  }
   0x1   :  { %8 = sst [smem:[#allocation2]] %s1572_s2 }
   0x2 LB: > { %s988_s15 = sadd.s32 4294967295, %s1110_s14   ;;  %p992_p0 = scmp.ge.s32.totalorder %s1110_s14, 1  ;;  %s1110_s14 = sphi %s1139_s14, %s14_s14  }
   0x3   : > { %p139_p1 = scmp.lt.s32.totalorder %s1110_s14, 3 }
   0x5   : > { %p140_p2 = pnand %p992_p0, %p139_p1 }
   0x6   : > { %v191_v0 = vld [vmem:[%s1571_s1] sm:$0xff] (!%p140_p2)  ;;  %s993_s2 = sshll.u32 (!%p140_p2), %s988_s15, 4  ;;  %vm192_vm0 = vcmask (!%p140_p2), 64512   ;;  %s1112_s22 = smov (!%p140_p2), 120  }
   0x7   : > { %143 = sbr.rel (%p140_p2) target bundleno = 864 (0x360), region = 32  ;;  %1032 = vmatprep.subr.mxu0 (!%p140_p2), %v191_v0  ;;  %1058 = vmatprep.subr.mxu1 (!%p140_p2), %v191_v0  ;;  %p164_p3 = scmp.lt.s32.totalorder (!%p140_p2), %s993_s2, 31 }
   0x8   : > { %1033 = vmatpush3.msra.mxu0 (!%p140_p2), %v191_v0  ;;  %1059 = vmatpush3.msra.mxu1 (!%p140_p2), %v191_v0  ;;  %s1113_s23 = smov (!%p140_p2), 112   ;;  %s1114_s24 = smov (!%p140_p2), 104  }
   0x9   : > { %s1115_s25 = smov (!%p140_p2), 8   ;;  %s594_s26 = sld [smem:[#allocation2]] (!%p140_p2) }
   0xe   : > { %s1575_s2 = smov (!%p164_p3, %s993_s2), 31 }
   0xf   : > { %s994_s18 = sshll.u32 %s1575_s2, 3  ;;  %v1336_v47 = vstv %s594_s26 }
  0x10   : > { %s167_s21 = scalar_lea.vmem %s1570_s0, %s994_s18  ;;  %s1533_s29 = scalar_lea.vmem %s1573_s3, %s994_s18 }
  0x11   : > { %v175_v1 = vld [vmem:[%s167_s21] sm:$0xff]  ;;  %v176_v3 = vld [vmem:[%s167_s21 + $0x8] sm:$0xff]  ;;  %v177_v5 = vld [vmem:[%s167_s21 + $0x10] sm:$0xff] }
  0x12   : > { %v183_v2 = vld [vmem:[%s167_s21 + $0x40] sm:$0xff]  ;;  %1034 = vmatprep.mubr.msk.f32.mxu0 %vm192_vm0, %v175_v1  ;;  %v184_v4 = vld [vmem:[%s167_s21 + $0x48] sm:$0xff]  ;;  %v185_v6 = vld [vmem:[%s167_s21 + $0x50] sm:$0xff] }
  0x13   : > { %1046 = vmatprep.mubr.msk.f32.mxu1 %vm192_vm0, %v183_v2  ;;  %1035 = vmatmul.mubr.msk.f32.vlgmr.msra.gmra.mrb[0].mxu0 %vm192_vm0, %v176_v3  ;;  %v178_v7 = vld [vmem:[%s167_s21 + $0x18] sm:$0xff]  ;;  %v179_v9 = vld [vmem:[%s167_s21 + $0x20] sm:$0xff]  ;;  %v180_v11 = vld [vmem:[%s167_s21 + $0x28] sm:$0xff] }
  0x14   : > { %1047 = vmatmul.mubr.msk.f32.vlgmr.msra.gmra.mrb[0].mxu1 %vm192_vm0, %v184_v4  ;;  %1037 = vmatprep.mubr.msk.f32.mxu0 %vm192_vm0, %v177_v5  ;;  %v186_v8 = vld [vmem:[%s167_s21 + $0x58] sm:$0xff]  ;;  %v187_v10 = vld [vmem:[%s167_s21 + $0x60] sm:$0xff]  ;;  %v188_v12 = vld [vmem:[%s167_s21 + $0x68] sm:$0xff] }
  0x15   : > { %1049 = vmatprep.mubr.msk.f32.mxu1 %vm192_vm0, %v185_v6  ;;  %v181_v13 = vld [vmem:[%s167_s21 + $0x30] sm:$0xff]  ;;  %v182_v15 = vld [vmem:[%s167_s21 + $0x38] sm:$0xff] }
  0x16   : > { %v189_v14 = vld [vmem:[%s167_s21 + $0x70] sm:$0xff]  ;;  %v190_v16 = vld [vmem:[%s167_s21 + $0x78] sm:$0xff] }
  0x17   : > { %1038 = vmatmul.mubr.msk.f32.gmra.mrb[2].mxu0 %vm192_vm0, %v178_v7 }
  0x18   : > { %1050 = vmatmul.mubr.msk.f32.gmra.mrb[2].mxu1 %vm192_vm0, %v186_v8  ;;  %1040 = vmatprep.mubr.msk.f32.mxu0 %vm192_vm0, %v179_v9 }
  0x19   : > { %1052 = vmatprep.mubr.msk.f32.mxu1 %vm192_vm0, %v187_v10 }
  0x1b   : > { %1041 = vmatmul.mubr.msk.f32.gmra.mrb[4].mxu0 %vm192_vm0, %v180_v11 }
  0x1c   : > { %1053 = vmatmul.mubr.msk.f32.gmra.mrb[4].mxu1 %vm192_vm0, %v188_v12  ;;  %1043 = vmatprep.mubr.msk.f32.mxu0 %vm192_vm0, %v181_v13 }
  0x1d   : > { %1055 = vmatprep.mubr.msk.f32.mxu1 %vm192_vm0, %v189_v14 }
  0x1f   : > { %1044 = vmatmul.mubr.msk.f32.gmra.mrb[6].mxu0 %vm192_vm0, %v182_v15 }
  0x20   : > { %1056 = vmatmul.mubr.msk.f32.gmra.mrb[6].mxu1 %vm192_vm0, %v190_v16 }
  0xe6   : > { %v1174_v17 = vpop.f32.mrb[0].mxu0 }
  0xe7   : > { %v1176_v18 = vpop.f32.mrb[0].mxu1  ;;  %404 = vrot.lane.b32.xlu0 %v1174_v17, %s1112_s22  ;;  %v1184_v20 = vpop.f32.mrb[1].mxu0 }
  0xe8   : > { %420 = vrot.lane.b32.xlu1 %v1176_v18, %s1112_s22  ;;  %v1180_v19 = vpop.f32.mrb[1].mxu1 }
  0xea   : > { %v1186_v21 = vpop.f32.mrb[2].mxu0 }
  0xeb   : > { %v1188_v22 = vpop.f32.mrb[2].mxu1  ;;  %402 = vrot.lane.b32.xlu0 %v1184_v20, %s1112_s22  ;;  %v1194_v23 = vpop.f32.mrb[3].mxu0 }
  0xec   : > { %468 = vrot.lane.b32.xlu1 %v1174_v17, %s1113_s23  ;;  %v1196_v24 = vpop.f32.mrb[3].mxu1 }
  0xee   : > { %v1198_v25 = vpop.f32.mrb[4].mxu0 }
  0xef   : > { %v1200_v26 = vpop.f32.mrb[4].mxu1  ;;  %418 = vrot.lane.b32.xlu0 %v1180_v19, %s1112_s22  ;;  %v1206_v27 = vpop.f32.mrb[5].mxu0 }
  0xf0   : > { %484 = vrot.lane.b32.xlu1 %v1176_v18, %s1113_s23  ;;  %v1208_v28 = vpop.f32.mrb[5].mxu1 }
  0xf2   : > { %v1210_v29 = vpop.f32.mrb[6].mxu0 }
  0xf3   : > { %v1212_v30 = vpop.f32.mrb[6].mxu1  ;;  %466 = vrot.lane.b32.xlu0 %v1184_v20, %s1113_s23  ;;  %v1218_v31 = vpop.f32.mrb[7].mxu0 }
  0xf4   : > { %532 = vrot.lane.b32.xlu1 %v1174_v17, %s1114_s24  ;;  %v1220_v32 = vpop.f32.mrb[7].mxu1 }
  0xf7   : > { %482 = vrot.lane.b32.xlu0 %v1180_v19, %s1113_s23 }
  0xf8   : > { %548 = vrot.lane.b32.xlu1 %v1176_v18, %s1114_s24 }
  0xfb   : > { %530 = vrot.lane.b32.xlu0 %v1184_v20, %s1114_s24 }
  0xfc   : > { %614 = vrot.lane.b32.xlu1 %v1174_v17, %s1115_s25 }
  0xff   : > { %546 = vrot.lane.b32.xlu0 %v1180_v19, %s1114_s24 }
 0x100   : > { %630 = vrot.lane.b32.xlu1 %v1176_v18, %s1115_s25 }
 0x103   : > { %612 = vrot.lane.b32.xlu0 %v1184_v20, %s1115_s25 }
 0x104   : > { %408 = vrot.lane.b32.xlu1 %v1186_v21, %s1112_s22 }
 0x107   : > { %628 = vrot.lane.b32.xlu0 %v1180_v19, %s1115_s25 }
 0x108   : > { %424 = vrot.lane.b32.xlu1 %v1188_v22, %s1112_s22 }
 0x10b   : > { %422 = vrot.lane.b32.xlu0 %v1196_v24, %s1112_s22 }
 0x10c   : > { %472 = vrot.lane.b32.xlu1 %v1186_v21, %s1113_s23 }
 0x10f   : > { %470 = vrot.lane.b32.xlu0 %v1194_v23, %s1113_s23 }
 0x110   : > { %488 = vrot.lane.b32.xlu1 %v1188_v22, %s1113_s23 }
 0x113   : > { %486 = vrot.lane.b32.xlu0 %v1196_v24, %s1113_s23 }
 0x114   : > { %536 = vrot.lane.b32.xlu1 %v1186_v21, %s1114_s24 }
 0x117   : > { %534 = vrot.lane.b32.xlu0 %v1194_v23, %s1114_s24 }
 0x118   : > { %552 = vrot.lane.b32.xlu1 %v1188_v22, %s1114_s24 }
 0x11b   : > { %550 = vrot.lane.b32.xlu0 %v1196_v24, %s1114_s24 }
 0x11c   : > { %618 = vrot.lane.b32.xlu1 %v1186_v21, %s1115_s25 }
 0x11f   : > { %616 = vrot.lane.b32.xlu0 %v1194_v23, %s1115_s25 }
 0x120   : > { %634 = vrot.lane.b32.xlu1 %v1188_v22, %s1115_s25 }
 0x123   : > { %632 = vrot.lane.b32.xlu0 %v1196_v24, %s1115_s25 }
 0x124   : > { %406 = vrot.lane.b32.xlu1 %v1194_v23, %s1112_s22 }
 0x127   : > { %410 = vrot.lane.b32.xlu0 %v1206_v27, %s1112_s22 }
 0x128   : > { %412 = vrot.lane.b32.xlu1 %v1198_v25, %s1112_s22 }
 0x12b   : > { %426 = vrot.lane.b32.xlu0 %v1208_v28, %s1112_s22 }
 0x12c   : > { %428 = vrot.lane.b32.xlu1 %v1200_v26, %s1112_s22 }
 0x12f   : > { %474 = vrot.lane.b32.xlu0 %v1206_v27, %s1113_s23 }
 0x130   : > { %476 = vrot.lane.b32.xlu1 %v1198_v25, %s1113_s23 }
 0x133   : > { %490 = vrot.lane.b32.xlu0 %v1208_v28, %s1113_s23 }
 0x134   : > { %492 = vrot.lane.b32.xlu1 %v1200_v26, %s1113_s23 }
 0x137   : > { %538 = vrot.lane.b32.xlu0 %v1206_v27, %s1114_s24 }
 0x138   : > { %540 = vrot.lane.b32.xlu1 %v1198_v25, %s1114_s24 }
 0x13b   : > { %554 = vrot.lane.b32.xlu0 %v1208_v28, %s1114_s24 }
 0x13c   : > { %556 = vrot.lane.b32.xlu1 %v1200_v26, %s1114_s24 }
 0x13f   : > { %620 = vrot.lane.b32.xlu0 %v1206_v27, %s1115_s25 }
 0x140   : > { %622 = vrot.lane.b32.xlu1 %v1198_v25, %s1115_s25 }
 0x143   : > { %636 = vrot.lane.b32.xlu0 %v1208_v28, %s1115_s25 }
 0x144   : > { %638 = vrot.lane.b32.xlu1 %v1200_v26, %s1115_s25 }
 0x147   : > { %414 = vrot.lane.b32.xlu0 %v1218_v31, %s1112_s22 }
 0x148   : > { %416 = vrot.lane.b32.xlu1 %v1210_v29, %s1112_s22 }
 0x14b   : > { %430 = vrot.lane.b32.xlu0 %v1220_v32, %s1112_s22 }
 0x14c   : > { %432 = vrot.lane.b32.xlu1 %v1212_v30, %s1112_s22 }
 0x14f   : > { %478 = vrot.lane.b32.xlu0 %v1218_v31, %s1113_s23 }
 0x150   : > { %480 = vrot.lane.b32.xlu1 %v1210_v29, %s1113_s23 }
 0x153   : > { %494 = vrot.lane.b32.xlu0 %v1220_v32, %s1113_s23 }
 0x154   : > { %496 = vrot.lane.b32.xlu1 %v1212_v30, %s1113_s23 }
 0x157   : > { %542 = vrot.lane.b32.xlu0 %v1218_v31, %s1114_s24 }
 0x158   : > { %544 = vrot.lane.b32.xlu1 %v1210_v29, %s1114_s24 }
 0x159   : > { %v405_v34 = vpop.permute.xlu0 %404 }
 0x15a   : > { %v421_v33 = vpop.permute.xlu1 %420  ;;  %v451_v39 = vmin.f32 %v1174_v17, %v405_v34 }
 0x15b   : > { %558 = vrot.lane.b32.xlu0 %v1220_v32, %s1114_s24  ;;  %v459_v43 = vmin.f32 %v1176_v18, %v421_v33 }
 0x15c   : > { %560 = vrot.lane.b32.xlu1 %v1212_v30, %s1114_s24 }
 0x15d   : > { %v403_v36 = vpop.permute.xlu0 %402 }
 0x15e   : > { %v469_v35 = vpop.permute.xlu1 %468  ;;  %v450_v49 = vmin.f32 %v1184_v20, %v403_v36 }
 0x15f   : > { %624 = vrot.lane.b32.xlu0 %v1218_v31, %s1115_s25  ;;  %v515_v42 = vmin.f32 %v451_v39, %v469_v35 }
 0x160   : > { %626 = vrot.lane.b32.xlu1 %v1210_v29, %s1115_s25 }
 0x161   : > { %v419_v38 = vpop.permute.xlu0 %418 }
 0x162   : > { %v485_v37 = vpop.permute.xlu1 %484  ;;  %v458_v56 = vmin.f32 %v1180_v19, %v419_v38 }
 0x163   : > { %640 = vrot.lane.b32.xlu0 %v1220_v32, %s1115_s25  ;;  %v523_v48 = vmin.f32 %v459_v43, %v485_v37 }
 0x164   : > { %642 = vrot.lane.b32.xlu1 %v1212_v30, %s1115_s25 }
 0x165   : > { %v467_v41 = vpop.permute.xlu0 %466 }
 0x166   : > { %v533_v40 = vpop.permute.xlu1 %532  ;;  %v514_v54 = vmin.f32 %v450_v49, %v467_v41 }
 0x167   : > { %v579_v44 = vmin.f32 %v515_v42, %v533_v40 }
 0x169   : > { %v483_v46 = vpop.permute.xlu0 %482  ;;  %v597_v51 = vmul.f32 %v1336_v47, %v579_v44 }
 0x16a   : > { %v549_v45 = vpop.permute.xlu1 %548  ;;  %v522_v62 = vmin.f32 %v458_v56, %v483_v46 }
 0x16b   : > { %v587_v50 = vmin.f32 %v523_v48, %v549_v45 }
 0x16d   : > { %v531_v53 = vpop.permute.xlu0 %530  ;;  %v605_v59 = vmul.f32 %v1336_v47, %v587_v50 }
 0x16e   : > { %v615_v52 = vpop.permute.xlu1 %614  ;;  %v578_v58 = vmin.f32 %v514_v54, %v531_v53 }
 0x16f   : > { %v1340_v55 = vadd.f32 %v615_v52, %v597_v51 }
 0x170   : > { %v596_v2 = vmul.f32 %v1336_v47, %v578_v58 }
 0x171   : > { %v677_v57 = vmax.f32 %v1340_v55, 0.0  ;;  %v547_v61 = vpop.permute.xlu0 %546 }
 0x172   : > { %v631_v60 = vpop.permute.xlu1 %630  ;;  %v586_v1 = vmin.f32 %v522_v62, %v547_v61 }
 0x173   : > { %v1345_v63 = vadd.f32 %v631_v60, %v605_v59  ;;  %710 = vrot.lane.b32.xlu1 %v677_v57, %s1112_s22 }
 0x174   : > { %v604_v7 = vmul.f32 %v1336_v47, %v586_v1 }
 0x175   : > { %v685_v0 = vmax.f32 %v1345_v63, 0.0  ;;  %v613_v3 = vpop.permute.xlu0 %612 }
 0x176   : > { %v409_v4 = vpop.permute.xlu1 %408  ;;  %v1352_v5 = vadd.f32 %v613_v3, %v596_v2 }
 0x177   : > { %726 = vrot.lane.b32.xlu1 %v685_v0, %s1112_s22  ;;  %v453_v16 = vmin.f32 %v1186_v21, %v409_v4 }
 0x178   : > { %v676_v6 = vmax.f32 %v1352_v5, 0.0 }
 0x179   : > { %v629_v8 = vpop.permute.xlu0 %628 }
 0x17a   : > { %v425_v9 = vpop.permute.xlu1 %424  ;;  %v1359_v10 = vadd.f32 %v629_v8, %v604_v7  ;;  %708 = vrot.lane.b32.xlu0 %v676_v6, %s1112_s22 }
 0x17b   : > { %v461_v20 = vmin.f32 %v1188_v22, %v425_v9 }
 0x17c   : > { %v684_v11 = vmax.f32 %v1359_v10, 0.0 }
 0x17d   : > { %v423_v12 = vpop.permute.xlu0 %422 }
 0x17e   : > { %v473_v13 = vpop.permute.xlu1 %472  ;;  %724 = vrot.lane.b32.xlu0 %v684_v11, %s1112_s22  ;;  %v460_v49 = vmin.f32 %v1196_v24, %v423_v12 }
 0x17f   : > { %v517_v19 = vmin.f32 %v453_v16, %v473_v13 }
 0x181   : > { %v471_v15 = vpop.permute.xlu0 %470 }
 0x182   : > { %v489_v14 = vpop.permute.xlu1 %488 }
 0x183   : > { %v525_v36 = vmin.f32 %v461_v20, %v489_v14 }
 0x185   : > { %v487_v18 = vpop.permute.xlu0 %486 }
 0x186   : > { %v537_v17 = vpop.permute.xlu1 %536  ;;  %v524_v51 = vmin.f32 %v460_v49, %v487_v18 }
 0x187   : > { %v581_v33 = vmin.f32 %v517_v19, %v537_v17 }
 0x189   : > { %v535_v35 = vpop.permute.xlu0 %534  ;;  %v599_v38 = vmul.f32 %v1336_v47, %v581_v33 }
 0x18a   : > { %v553_v34 = vpop.permute.xlu1 %552 }
 0x18b   : > { %v589_v37 = vmin.f32 %v525_v36, %v553_v34 }
 0x18d   : > { %v551_v40 = vpop.permute.xlu0 %550  ;;  %v607_v21 = vmul.f32 %v1336_v47, %v589_v37 }
 0x18e   : > { %v619_v39 = vpop.permute.xlu1 %618  ;;  %v588_v56 = vmin.f32 %v524_v51, %v551_v40 }
 0x18f   : > { %v1371_v41 = vadd.f32 %v619_v39, %v599_v38 }
 0x190   : > { %v606_v62 = vmul.f32 %v1336_v47, %v588_v56 }
 0x191   : > { %v679_v42 = vmax.f32 %v1371_v41, 0.0  ;;  %v617_v44 = vpop.permute.xlu0 %616 }
 0x192   : > { %v635_v43 = vpop.permute.xlu1 %634 }
 0x193   : > { %v1375_v45 = vadd.f32 %v635_v43, %v607_v21  ;;  %714 = vrot.lane.b32.xlu1 %v679_v42, %s1112_s22 }
 0x195   : > { %v687_v22 = vmax.f32 %v1375_v45, 0.0  ;;  %v633_v46 = vpop.permute.xlu0 %632 }
 0x196   : > { %v407_v48 = vpop.permute.xlu1 %406  ;;  %v1390_v24 = vadd.f32 %v633_v46, %v606_v62 }
 0x197   : > { %v452_v50 = vmin.f32 %v1194_v23, %v407_v48  ;;  %730 = vrot.lane.b32.xlu1 %v687_v22, %s1112_s22 }
 0x198   : > { %v686_v4 = vmax.f32 %v1390_v24, 0.0 }
 0x199   : > { %v516_v52 = vmin.f32 %v452_v50, %v471_v15  ;;  %v411_v54 = vpop.permute.xlu0 %410 }
 0x19a   : > { %v413_v53 = vpop.permute.xlu1 %412  ;;  %v454_v12 = vmin.f32 %v1206_v27, %v411_v54 }
 0x19b   : > { %v580_v58 = vmin.f32 %v516_v52, %v535_v35  ;;  %v455_v9 = vmin.f32 %v1198_v25, %v413_v53 }
 0x19d   : > { %v598_v59 = vmul.f32 %v1336_v47, %v580_v58  ;;  %v427_v61 = vpop.permute.xlu0 %426 }
 0x19e   : > { %v429_v60 = vpop.permute.xlu1 %428  ;;  %v462_v18 = vmin.f32 %v1208_v28, %v427_v61 }
 0x19f   : > { %v1388_v1 = vadd.f32 %v617_v44, %v598_v59  ;;  %v463_v17 = vmin.f32 %v1200_v26, %v429_v60 }
 0x1a1   : > { %v678_v23 = vmax.f32 %v1388_v1, 0.0  ;;  %v475_v3 = vpop.permute.xlu0 %474 }
 0x1a2   : > { %v477_v2 = vpop.permute.xlu1 %476  ;;  %v518_v16 = vmin.f32 %v454_v12, %v475_v3 }
 0x1a3   : > { %712 = vrot.lane.b32.xlu0 %v678_v23, %s1112_s22  ;;  %v519_v15 = vmin.f32 %v455_v9, %v477_v2 }
 0x1a5   : > { %v491_v8 = vpop.permute.xlu0 %490 }
 0x1a6   : > { %v493_v7 = vpop.permute.xlu1 %492  ;;  %v526_v36 = vmin.f32 %v462_v18, %v491_v8 }
 0x1a7   : > { %728 = vrot.lane.b32.xlu0 %v686_v4, %s1112_s22  ;;  %v527_v35 = vmin.f32 %v463_v17, %v493_v7 }
 0x1a9   : > { %v539_v14 = vpop.permute.xlu0 %538 }
 0x1aa   : > { %v541_v13 = vpop.permute.xlu1 %540  ;;  %v582_v20 = vmin.f32 %v518_v16, %v539_v14 }
 0x1ab   : > { %v583_v19 = vmin.f32 %v519_v15, %v541_v13 }
 0x1ac   : > { %v600_v27 = vmul.f32 %v1336_v47, %v582_v20 }
 0x1ad   : > { %v555_v34 = vpop.permute.xlu0 %554  ;;  %v601_v25 = vmul.f32 %v1336_v47, %v583_v19 }
 0x1ae   : > { %v557_v33 = vpop.permute.xlu1 %556  ;;  %v590_v38 = vmin.f32 %v526_v36, %v555_v34 }
 0x1af   : > { %v591_v37 = vmin.f32 %v527_v35, %v557_v33 }
 0x1b0   : > { %v608_v46 = vmul.f32 %v1336_v47, %v590_v38 }
 0x1b1   : > { %v621_v40 = vpop.permute.xlu0 %620  ;;  %v609_v44 = vmul.f32 %v1336_v47, %v591_v37 }
 0x1b2   : > { %v623_v39 = vpop.permute.xlu1 %622  ;;  %v1408_v43 = vadd.f32 %v621_v40, %v600_v27 }
 0x1b3   : > { %v1406_v21 = vadd.f32 %v623_v39, %v601_v25 }
 0x1b4   : > { %v680_v28 = vmax.f32 %v1408_v43, 0.0 }
 0x1b5   : > { %v681_v26 = vmax.f32 %v1406_v21, 0.0  ;;  %v637_v49 = vpop.permute.xlu0 %636 }
 0x1b6   : > { %v639_v48 = vpop.permute.xlu1 %638  ;;  %v1416_v51 = vadd.f32 %v637_v49, %v608_v46  ;;  %716 = vrot.lane.b32.xlu0 %v680_v28, %s1112_s22 }
 0x1b7   : > { %v1414_v50 = vadd.f32 %v639_v48, %v609_v44  ;;  %718 = vrot.lane.b32.xlu1 %v681_v26, %s1112_s22 }
 0x1b8   : > { %v688_v53 = vmax.f32 %v1416_v51, 0.0 }
 0x1b9   : > { %v689_v52 = vmax.f32 %v1414_v50, 0.0  ;;  %v415_v56 = vpop.permute.xlu0 %414 }
 0x1ba   : > { %v417_v54 = vpop.permute.xlu1 %416  ;;  %732 = vrot.lane.b32.xlu0 %v688_v53, %s1112_s22  ;;  %v456_v7 = vmin.f32 %v1218_v31, %v415_v56 }
 0x1bb   : > { %734 = vrot.lane.b32.xlu1 %v689_v52, %s1112_s22  ;;  %v457_v3 = vmin.f32 %v1210_v29, %v417_v54 }
 0x1bd   : > { %v431_v59 = vpop.permute.xlu0 %430 }
 0x1be   : > { %v433_v58 = vpop.permute.xlu1 %432  ;;  %v464_v15 = vmin.f32 %v1220_v32, %v431_v59 }
 0x1bf   : > { %v465_v14 = vmin.f32 %v1212_v30, %v433_v58 }
 0x1c1   : > { %v479_v61 = vpop.permute.xlu0 %478 }
 0x1c2   : > { %v481_v60 = vpop.permute.xlu1 %480  ;;  %v520_v13 = vmin.f32 %v456_v7, %v479_v61 }
 0x1c3   : > { %v521_v12 = vmin.f32 %v457_v3, %v481_v60 }
 0x1c5   : > { %v495_v2 = vpop.permute.xlu0 %494 }
 0x1c6   : > { %v497_v62 = vpop.permute.xlu1 %496  ;;  %v528_v33 = vmin.f32 %v464_v15, %v495_v2 }
 0x1c7   : > { %v529_v20 = vmin.f32 %v465_v14, %v497_v62 }
 0x1c9   : > { %v543_v9 = vpop.permute.xlu0 %542 }
 0x1ca   : > { %v545_v8 = vpop.permute.xlu1 %544  ;;  %v584_v17 = vmin.f32 %v520_v13, %v543_v9 }
 0x1cb   : > { %v585_v16 = vmin.f32 %v521_v12, %v545_v8 }
 0x1cc   : > { %v602_v31 = vmul.f32 %v1336_v47, %v584_v17 }
 0x1cd   : > { %v559_v19 = vpop.permute.xlu0 %558  ;;  %v603_v29 = vmul.f32 %v1336_v47, %v585_v16 }
 0x1ce   : > { %v561_v18 = vpop.permute.xlu1 %560  ;;  %v592_v35 = vmin.f32 %v528_v33, %v559_v19 }
 0x1cf   : > { %v593_v34 = vmin.f32 %v529_v20, %v561_v18 }
 0x1d0   : > { %v610_v39 = vmul.f32 %v1336_v47, %v592_v35 }
 0x1d1   : > { %v625_v37 = vpop.permute.xlu0 %624  ;;  %v611_v27 = vmul.f32 %v1336_v47, %v593_v34 }
 0x1d2   : > { %v627_v36 = vpop.permute.xlu1 %626  ;;  %v1440_v25 = vadd.f32 %v625_v37, %v602_v31 }
 0x1d3   : > { %v1438_v38 = vadd.f32 %v627_v36, %v603_v29 }
 0x1d4   : > { %v682_v32 = vmax.f32 %v1440_v25, 0.0 }
 0x1d5   : > { %v683_v30 = vmax.f32 %v1438_v38, 0.0  ;;  %v641_v44 = vpop.permute.xlu0 %640 }
 0x1d6   : > { %v643_v40 = vpop.permute.xlu1 %642  ;;  %v1448_v48 = vadd.f32 %v641_v44, %v610_v39  ;;  %720 = vrot.lane.b32.xlu0 %v682_v32, %s1112_s22 }
 0x1d7   : > { %v1446_v46 = vadd.f32 %v643_v40, %v611_v27  ;;  %722 = vrot.lane.b32.xlu1 %v683_v30, %s1112_s22 }
 0x1d8   : > { %v690_v54 = vmax.f32 %v1448_v48, 0.0 }
 0x1d9   : > { %v691_v49 = vmax.f32 %v1446_v46, 0.0 }
 0x1da   : > { %736 = vrot.lane.b32.xlu0 %v690_v54, %s1112_s22 }
 0x1db   : > { %738 = vrot.lane.b32.xlu1 %v691_v49, %s1112_s22 }
 0x1e5   : > { %v711_v47 = vpop.permute.xlu1 %710 }
 0x1e6   : > { %v759_v61 = vsel %vm192_vm0, %v711_v47, 0.0 }
 0x1e9   : > { %v727_v56 = vpop.permute.xlu1 %726 }
 0x1ea   : > { %v783_v59 = vsel %vm192_vm0, %v727_v56, 0.0 }
 0x1ec   : > { %v709_v58 = vpop.permute.xlu0 %708 }
 0x1ed   : > { %v756_v60 = vsel %vm192_vm0, %v709_v58, 0.0 }
 0x1f0   : > { %v725_v62 = vpop.permute.xlu0 %724 }
 0x1f1   : > { %v780_v2 = vsel %vm192_vm0, %v725_v62, 0.0 }
 0x1f9   : > { %784 = vadd.xlane.f32.xlu0 %v783_v59 }
 0x1fd   : > { %757 = vadd.xlane.f32.xlu0 %v756_v60 }
 0x1ff   : > { %760 = vadd.xlane.f32.xlu1 %v759_v61 }
 0x203   : > { %781 = vadd.xlane.f32.xlu1 %v780_v2 }
 0x205   : > { %v715_v3 = vpop.permute.xlu1 %714 }
 0x206   : > { %v765_v7 = vsel %vm192_vm0, %v715_v3, 0.0 }
 0x207   : > { %766 = vadd.xlane.f32.xlu0 %v765_v7 }
 0x209   : > { %v731_v8 = vpop.permute.xlu1 %730 }
 0x20a   : > { %v789_v9 = vsel %vm192_vm0, %v731_v8, 0.0 }
 0x20b   : > { %790 = vadd.xlane.f32.xlu0 %v789_v9 }
 0x215   : > { %v713_v12 = vpop.permute.xlu0 %712 }
 0x216   : > { %v762_v13 = vsel %vm192_vm0, %v713_v12, 0.0 }
 0x217   : > { %763 = vadd.xlane.f32.xlu0 %v762_v13 }
 0x219   : > { %v729_v14 = vpop.permute.xlu0 %728 }
 0x21a   : > { %v786_v15 = vsel %vm192_vm0, %v729_v14, 0.0 }
 0x21b   : > { %787 = vadd.xlane.f32.xlu1 %v786_v15 }
 0x228   : > { %v717_v17 = vpop.permute.xlu0 %716 }
 0x229   : > { %v719_v16 = vpop.permute.xlu1 %718  ;;  %v768_v19 = vsel %vm192_vm0, %v717_v17, 0.0 }
 0x22a   : > { %v771_v18 = vsel %vm192_vm0, %v719_v16, 0.0  ;;  %769 = vadd.xlane.f32.xlu1 %v768_v19 }
 0x22b   : > { %772 = vadd.xlane.f32.xlu0 %v771_v18 }
 0x22c   : > { %v733_v33 = vpop.permute.xlu0 %732 }
 0x22d   : > { %v735_v20 = vpop.permute.xlu1 %734  ;;  %v792_v35 = vsel %vm192_vm0, %v733_v33, 0.0 }
 0x22e   : > { %v795_v34 = vsel %vm192_vm0, %v735_v20, 0.0  ;;  %793 = vadd.xlane.f32.xlu1 %v792_v35 }
 0x22f   : > { %796 = vadd.xlane.f32.xlu0 %v795_v34 }
 0x248   : > { %v721_v31 = vpop.permute.xlu0 %720 }
 0x249   : > { %v723_v29 = vpop.permute.xlu1 %722  ;;  %v774_v37 = vsel %vm192_vm0, %v721_v31, 0.0 }
 0x24a   : > { %v777_v36 = vsel %vm192_vm0, %v723_v29, 0.0  ;;  %775 = vadd.xlane.f32.xlu1 %v774_v37 }
 0x24b   : > { %778 = vadd.xlane.f32.xlu0 %v777_v36 }
 0x24c   : > { %v737_v39 = vpop.permute.xlu0 %736 }
 0x24d   : > { %v739_v27 = vpop.permute.xlu1 %738  ;;  %v798_v44 = vsel %vm192_vm0, %v737_v39, 0.0 }
 0x24e   : > { %v801_v40 = vsel %vm192_vm0, %v739_v27, 0.0  ;;  %799 = vadd.xlane.f32.xlu1 %v798_v44 }
 0x24f   : > { %802 = vadd.xlane.f32.xlu0 %v801_v40 }
 0x286   : > { %v785_v47 = vpop.xlane.xlu0 %784 }
 0x287   : > { %v813_v56 = vmax.f32 %v785_v47, 1e-30 }
 0x289   : > { %1072 = vrcp.f32 %v813_v56 }
 0x28a   : > { %v758_v58 = vpop.xlane.xlu0 %757 }
 0x28b   : > { %v804_v59 = vmax.f32 %v758_v58, 1e-30 }
 0x28c   : > { %v761_v60 = vpop.xlane.xlu1 %760 }
 0x28d   : > { %v805_v61 = vmax.f32 %v761_v60, 1e-30  ;;  %1074 = vrcp.f32 %v804_v59 }
 0x28f   : > { %1076 = vrcp.f32 %v805_v61 }
 0x290   : > { %v782_v62 = vpop.xlane.xlu1 %781 }
 0x291   : > { %v812_v2 = vmax.f32 %v782_v62, 1e-30 }
 0x293   : > { %1078 = vrcp.f32 %v812_v2  ;;  %v1073_v3 = vpop.eup %1072 }
 0x294   : > { %v767_v7 = vpop.xlane.xlu0 %766  ;;  %v845_v9 = vmul.f32 %v1073_v3, %v685_v0 }
 0x295   : > { %v807_v8 = vmax.f32 %v767_v7, 1e-30 }
 0x296   : > { %886 = vrot.lane.b32.xlu1 %v845_v9, %s1112_s22 }
 0x297   : > { %1080 = vrcp.f32 %v807_v8  ;;  %v1075_v12 = vpop.eup %1074 }
 0x298   : > { %v791_v13 = vpop.xlane.xlu0 %790  ;;  %v836_v16 = vmul.f32 %v1075_v12, %v676_v6 }
 0x299   : > { %v1077_v14 = vpop.eup %1076  ;;  %v815_v15 = vmax.f32 %v791_v13, 1e-30 }
 0x29a   : > { %v837_v17 = vmul.f32 %v1077_v14, %v677_v57  ;;  %868 = vrot.lane.b32.xlu1 %v836_v16, %s1112_s22 }
 0x29b   : > { %1082 = vrcp.f32 %v815_v15 }
 0x29c   : > { %870 = vrot.lane.b32.xlu0 %v837_v17, %s1112_s22 }
 0x29d   : > { %v1079_v63 = vpop.eup %1078 }
 0x29e   : > { %v844_v0 = vmul.f32 %v1079_v63, %v684_v11 }
 0x2a0   : > { %884 = vrot.lane.b32.xlu0 %v844_v0, %s1112_s22 }
 0x2a1   : > { %v1081_v18 = vpop.eup %1080 }
 0x2a2   : > { %v839_v19 = vmul.f32 %v1081_v18, %v679_v42 }
 0x2a4   : > { %874 = vrot.lane.b32.xlu1 %v839_v19, %s1112_s22  ;;  %v764_v5 = vpop.xlane.xlu0 %763 }
 0x2a5   : > { %v1083_v55 = vpop.eup %1082  ;;  %v806_v57 = vmax.f32 %v764_v5, 1e-30 }
 0x2a6   : > { %v847_v6 = vmul.f32 %v1083_v55, %v687_v22 }
 0x2a7   : > { %1084 = vrcp.f32 %v806_v57 }
 0x2a8   : > { %v788_v20 = vpop.xlane.xlu1 %787  ;;  %890 = vrot.lane.b32.xlu1 %v847_v6, %s1112_s22 }
 0x2a9   : > { %v814_v10 = vmax.f32 %v788_v20, 1e-30 }
 0x2ab   : > { %1086 = vrcp.f32 %v814_v10 }
 0x2b1   : > { %v1085_v11 = vpop.eup %1084 }
 0x2b2   : > { %v838_v33 = vmul.f32 %v1085_v11, %v678_v23 }
 0x2b4   : > { %872 = vrot.lane.b32.xlu1 %v838_v33, %s1112_s22 }
 0x2b5   : > { %v1087_v41 = vpop.eup %1086 }
 0x2b6   : > { %v846_v42 = vmul.f32 %v1087_v41, %v686_v4 }
 0x2b7   : > { %v770_v45 = vpop.xlane.xlu1 %769 }
 0x2b8   : > { %888 = vrot.lane.b32.xlu0 %v846_v42, %s1112_s22  ;;  %v773_v22 = vpop.xlane.xlu0 %772  ;;  %v808_v34 = vmax.f32 %v770_v45, 1e-30 }
 0x2b9   : > { %v809_v35 = vmax.f32 %v773_v22, 1e-30 }
 0x2ba   : > { %1088 = vrcp.f32 %v808_v34 }
 0x2bb   : > { %1090 = vrcp.f32 %v809_v35  ;;  %v794_v29 = vpop.xlane.xlu1 %793 }
 0x2bc   : > { %v797_v31 = vpop.xlane.xlu0 %796  ;;  %v816_v36 = vmax.f32 %v794_v29, 1e-30 }
 0x2bd   : > { %v817_v37 = vmax.f32 %v797_v31, 1e-30 }
 0x2be   : > { %1092 = vrcp.f32 %v816_v36 }
 0x2bf   : > { %1094 = vrcp.f32 %v817_v37 }
 0x2c4   : > { %v1089_v1 = vpop.eup %1088 }
 0x2c5   : > { %v1091_v23 = vpop.eup %1090  ;;  %v840_v24 = vmul.f32 %v1089_v1, %v680_v28 }
 0x2c6   : > { %v841_v4 = vmul.f32 %v1091_v23, %v681_v26 }
 0x2c7   : > { %876 = vrot.lane.b32.xlu0 %v840_v24, %s1112_s22 }
 0x2c8   : > { %v1093_v27 = vpop.eup %1092  ;;  %878 = vrot.lane.b32.xlu1 %v841_v4, %s1112_s22 }
 0x2c9   : > { %v1095_v39 = vpop.eup %1094  ;;  %v848_v40 = vmul.f32 %v1093_v27, %v688_v53 }
 0x2ca   : > { %v849_v44 = vmul.f32 %v1095_v39, %v689_v52 }
 0x2cb   : > { %892 = vrot.lane.b32.xlu0 %v848_v40, %s1112_s22 }
 0x2cc   : > { %894 = vrot.lane.b32.xlu1 %v849_v44, %s1112_s22 }
 0x2d7   : > { %v776_v43 = vpop.xlane.xlu1 %775 }
 0x2d8   : > { %v779_v28 = vpop.xlane.xlu0 %778  ;;  %v810_v21 = vmax.f32 %v776_v43, 1e-30 }
 0x2d9   : > { %v811_v26 = vmax.f32 %v779_v28, 1e-30 }
 0x2da   : > { %1096 = vrcp.f32 %v810_v21 }
 0x2db   : > { %1098 = vrcp.f32 %v811_v26  ;;  %v800_v47 = vpop.xlane.xlu1 %799 }
 0x2dc   : > { %v803_v56 = vpop.xlane.xlu0 %802  ;;  %v818_v58 = vmax.f32 %v800_v47, 1e-30 }
 0x2dd   : > { %v819_v59 = vmax.f32 %v803_v56, 1e-30 }
 0x2de   : > { %1100 = vrcp.f32 %v818_v58 }
 0x2df   : > { %1102 = vrcp.f32 %v819_v59 }
 0x2e4   : > { %v1097_v51 = vpop.eup %1096 }
 0x2e5   : > { %v1099_v50 = vpop.eup %1098  ;;  %v842_v52 = vmul.f32 %v1097_v51, %v682_v32 }
 0x2e6   : > { %v843_v53 = vmul.f32 %v1099_v50, %v683_v30 }
 0x2e7   : > { %880 = vrot.lane.b32.xlu0 %v842_v52, %s1112_s22 }
 0x2e8   : > { %v1101_v60 = vpop.eup %1100  ;;  %882 = vrot.lane.b32.xlu1 %v843_v53, %s1112_s22 }
 0x2e9   : > { %v1103_v61 = vpop.eup %1102  ;;  %v850_v62 = vmul.f32 %v1101_v60, %v690_v54 }
 0x2ea   : > { %v851_v2 = vmul.f32 %v1103_v61, %v691_v49 }
 0x2eb   : > { %896 = vrot.lane.b32.xlu0 %v850_v62, %s1112_s22 }
 0x2ec   : > { %898 = vrot.lane.b32.xlu1 %v851_v2, %s1112_s22 }
 0x308   : > { %v887_v38 = vpop.permute.xlu1 %886 }
 0x309   : > { %925 = vst.msk [vmem:[%s1533_s29 + $0x48] sm:$0xff] %vm192_vm0, %v887_v38 }
 0x30c   : > { %v869_v25 = vpop.permute.xlu1 %868 }
 0x30d   : > { %916 = vst.msk [vmem:[%s1533_s29] sm:$0xff] %vm192_vm0, %v869_v25 }
 0x30e   : > { %v871_v30 = vpop.permute.xlu0 %870 }
 0x30f   : > { %917 = vst.msk [vmem:[%s1533_s29 + $0x8] sm:$0xff] %vm192_vm0, %v871_v30 }
 0x312   : > { %v885_v32 = vpop.permute.xlu0 %884 }
 0x313   : > { %924 = vst.msk [vmem:[%s1533_s29 + $0x40] sm:$0xff] %vm192_vm0, %v885_v32 }
 0x316   : > { %v875_v46 = vpop.permute.xlu1 %874 }
 0x317   : > { %919 = vst.msk [vmem:[%s1533_s29 + $0x18] sm:$0xff] %vm192_vm0, %v875_v46 }
 0x31a   : > { %v891_v48 = vpop.permute.xlu1 %890 }
 0x31b   : > { %927 = vst.msk [vmem:[%s1533_s29 + $0x58] sm:$0xff] %vm192_vm0, %v891_v48 }
 0x326   : > { %v873_v49 = vpop.permute.xlu1 %872 }
 0x327   : > { %918 = vst.msk [vmem:[%s1533_s29 + $0x10] sm:$0xff] %vm192_vm0, %v873_v49 }
 0x32a   : > { %v889_v54 = vpop.permute.xlu0 %888 }
 0x32b   : > { %926 = vst.msk [vmem:[%s1533_s29 + $0x50] sm:$0xff] %vm192_vm0, %v889_v54 }
 0x339   : > { %v877_v3 = vpop.permute.xlu0 %876 }
 0x33a   : > { %v879_v7 = vpop.permute.xlu1 %878  ;;  %920 = vst.msk [vmem:[%s1533_s29 + $0x20] sm:$0xff] %vm192_vm0, %v877_v3 }
 0x33b   : > { %921 = vst.msk [vmem:[%s1533_s29 + $0x28] sm:$0xff] %vm192_vm0, %v879_v7 }
 0x33d   : > { %v893_v8 = vpop.permute.xlu0 %892 }
 0x33e   : > { %v895_v9 = vpop.permute.xlu1 %894  ;;  %928 = vst.msk [vmem:[%s1533_s29 + $0x60] sm:$0xff] %vm192_vm0, %v893_v8 }
 0x33f   : > { %929 = vst.msk [vmem:[%s1533_s29 + $0x68] sm:$0xff] %vm192_vm0, %v895_v9 }
 0x359   : > { %v881_v12 = vpop.permute.xlu0 %880 }
 0x35a   : > { %v883_v13 = vpop.permute.xlu1 %882  ;;  %922 = vst.msk [vmem:[%s1533_s29 + $0x30] sm:$0xff] %vm192_vm0, %v881_v12 }
 0x35b   : > { %923 = vst.msk [vmem:[%s1533_s29 + $0x38] sm:$0xff] %vm192_vm0, %v883_v13 }
 0x35d   : > { %v897_v14 = vpop.permute.xlu0 %896 }
 0x35e   : > { %v899_v15 = vpop.permute.xlu1 %898  ;;  %930 = vst.msk [vmem:[%s1533_s29 + $0x70] sm:$0xff] %vm192_vm0, %v897_v14 }
 0x35f   : > { %931 = vst.msk [vmem:[%s1533_s29 + $0x78] sm:$0xff] %vm192_vm0, %v899_v15 }
 0x360 PF: > { %s14_s14 = sadd.s32 1, %s1110_s14  }
 0x361   : > { %p11_p4 = scmp.ge.s32.totalorder %s14_s14, 4  }
 0x363   :  { %13 = sbr.rel (!%p11_p4) target bundleno = 2 (0x2), region = 62 }

</bundles_post_ra>
